<compile_context>
chip_gen: v7x
topology: tpu7x:2x2x1
jax: 0.10.0
libtpu: 0.0.40
codegen_flags: <defaults>
</compile_context>

<pallas_src>
import functools

import jax
import jax.numpy as jnp
from jax import lax
from jax.experimental import pallas as pl
from jax.experimental.pallas import tpu as pltpu

EPS = 1e-5
LANE = 128
MAX_TM = 512                      # matmul row tile (multiple of 8)
MAX_TK = 512                      # contraction tile cap (multiple of 128)
MAX_TM_ELEM = 2048                # row tile cap for the HBM-bound elementwise pass
# Per-step footprint stays well under 32 MiB even for 512-channel BasicBlocks
# (resident 3x3x512x512 bf16 weight ~4.7 MiB + double-buffered x/y tiles +
# f32 accumulator ~ 12 MiB), so this budget is safe on v7x's 64 MiB VMEM too.
VMEM_LIMIT = 32 * 1024 * 1024


def _round_up(x, m):
    return (x + m - 1) // m * m


def _pick_k_tiling(kdim):
    """Choose the K tile first (balanced, <=MAX_TK, multiple of 128), then pad K."""
    k_base = _round_up(kdim, LANE)
    n_k = pl.cdiv(k_base, MAX_TK)
    tk = _round_up(pl.cdiv(k_base, n_k), LANE)
    return tk, n_k * tk            # (tk, k_pad)


def _pick_m_tiling(m):
    """Row tile (multiple of 8); guarantee >=2 M tiles when possible (dual-TC v7x)."""
    tm = min(MAX_TM, _round_up(m, 8))
    if _round_up(m, tm) // tm < 2 and m > 8:
        tm = _round_up(pl.cdiv(m, 2), 8)
    m_pad = _round_up(m, tm)
    return tm, m_pad


# ----------------------------- Pallas kernels ------------------------------ #

def _make_conv_kernel(tk):
    """(TM,TK)x(TK,Cpad) matmul step; K is the trailing 'arbitrary' axis.

    The whole bf16 weight is resident in VMEM; the current K slice is taken
    with pl.ds.  On the last K step the resident f32 accumulator is written
    out in bf16 together with per-M-tile partial sums / sums-of-squares for
    BatchNorm (zero-padded rows/channels contribute exactly zero).
    """

    def kernel(xcol_ref, w_ref, y_ref, stats_ref, acc_ref):
        k = pl.program_id(1)

        @pl.when(k == 0)
        def _init():
            acc_ref[...] = jnp.zeros_like(acc_ref)

        k0 = pl.multiple_of(k * tk, tk)
        acc_ref[...] += jnp.dot(xcol_ref[...], w_ref[pl.ds(k0, tk), :],
                                preferred_element_type=jnp.float32)

        @pl.when(k == pl.num_programs(1) - 1)
        def _finalize():
            y = acc_ref[...]
            y_ref[...] = y.astype(y_ref.dtype)
            # Direct sliced stores: no concatenate / reshape temporaries.
            stats_ref[0, 0:1, :] = jnp.sum(y, axis=0, keepdims=True)
            stats_ref[0, 1:2, :] = jnp.sum(y * y, axis=0, keepdims=True)

    return kernel


def bn_add_bn_relu_kernel(y_ref, scale_ref, shift_ref,
                          r_ref, rscale_ref, rshift_ref, o_ref):
    # Folded BN of main branch + folded BN of shortcut + add + ReLU (one pass).
    y = y_ref[...].astype(jnp.float32) * scale_ref[...] + shift_ref[...]
    r = r_ref[...].astype(jnp.float32) * rscale_ref[...] + rshift_ref[...]
    o_ref[...] = jnp.maximum(y + r, 0.0).astype(o_ref.dtype)


# --------------------------- pallas_call wrappers --------------------------- #

def _conv_matmul_stats(xcol, w_mat, m_pad, c_pad, tm):
    """Tiled conv-as-matmul. Returns (y bf16 (m_pad,c_pad), per-tile f32 stats)."""
    m, kdim = xcol.shape
    _, cout = w_mat.shape
    tk, k_pad = _pick_k_tiling(kdim)
    n_m, n_k = m_pad // tm, k_pad // tk

    x_p = jnp.pad(xcol.astype(jnp.bfloat16), ((0, m_pad - m), (0, k_pad - kdim)))
    w_p = jnp.pad(w_mat.astype(jnp.bfloat16), ((0, k_pad - kdim), (0, c_pad - cout)))

    bytes_accessed = int(x_p.size * 2 + w_p.size * 2            # weights DMA'd once
                         + m_pad * c_pad * 2 + n_m * 2 * c_pad * 4)
    return pl.pallas_call(
        _make_conv_kernel(tk),
        out_shape=(jax.ShapeDtypeStruct((m_pad, c_pad), jnp.bfloat16),
                   jax.ShapeDtypeStruct((n_m, 2, c_pad), jnp.float32)),
        grid_spec=pltpu.PrefetchScalarGridSpec(
            num_scalar_prefetch=0,
            grid=(n_m, n_k),
            in_specs=[pl.BlockSpec((tm, tk), lambda i, k: (i, k)),
                      # Whole weight resident in VMEM: constant block index
                      # means it is DMA'd once, not re-streamed per M tile.
                      pl.BlockSpec((k_pad, c_pad), lambda i, k: (0, 0))],
            out_specs=(pl.BlockSpec((tm, c_pad), lambda i, k: (i, 0)),
                       pl.BlockSpec((1, 2, c_pad), lambda i, k: (i, 0, 0))),
            scratch_shapes=[pltpu.VMEM((tm, c_pad), jnp.float32)]),
        compiler_params=pltpu.CompilerParams(
            dimension_semantics=("parallel", "arbitrary"),
            vmem_limit_bytes=VMEM_LIMIT),
        cost_estimate=pl.CostEstimate(flops=2 * m_pad * k_pad * c_pad,
                                      transcendentals=0,
                                      bytes_accessed=bytes_accessed),
    )(x_p, w_p)


def _bn_add_act(y, scale, shift, r, rscale, rshift, tm, out_dtype=jnp.float32):
    """Tiled elementwise pass: y*scale+shift + r*rscale+rshift, ReLU."""
    m_pad, c_pad = y.shape
    n_m = m_pad // tm
    # This pass is purely HBM-bound: use a larger independent row tile
    # (multiple of tm so it divides m_pad), keeping >=2 grid steps if possible.
    tm_e = tm
    for d in range(n_m, 0, -1):
        if n_m % d == 0 and d * tm <= MAX_TM_ELEM and (n_m // d >= 2 or n_m == 1):
            tm_e = d * tm
            break
    n_e = m_pad // tm_e

    row_spec = pl.BlockSpec((tm_e, c_pad), lambda i: (i, 0))
    vec_spec = pl.BlockSpec((1, c_pad), lambda i: (0, 0))
    args = (y, scale, shift, r, rscale, rshift)
    bytes_accessed = int(sum(a.size * a.dtype.itemsize for a in args)
                         + m_pad * c_pad * jnp.dtype(out_dtype).itemsize)
    return pl.pallas_call(
        bn_add_bn_relu_kernel,
        out_shape=jax.ShapeDtypeStruct((m_pad, c_pad), out_dtype),
        grid_spec=pltpu.PrefetchScalarGridSpec(
            num_scalar_prefetch=0,
            grid=(n_e,),
            in_specs=[row_spec, vec_spec, vec_spec, row_spec, vec_spec, vec_spec],
            out_specs=row_spec),
        compiler_params=pltpu.CompilerParams(
            dimension_semantics=("parallel",),
            vmem_limit_bytes=VMEM_LIMIT),
        cost_estimate=pl.CostEstimate(flops=6 * m_pad * c_pad,
                                      transcendentals=0,
                                      bytes_accessed=bytes_accessed),
    )(*args)


# ------------------------------- JAX glue ---------------------------------- #

def _im2col(x_nhwc, ksize, stride, pad):
    """x: (N,H,W,C) -> (N*Ho*Wo, ksize*ksize*C), tap-major / channel-minor."""
    n, h, w, c = x_nhwc.shape
    xp = jnp.pad(x_nhwc, ((0, 0), (pad, pad), (pad, pad), (0, 0)))
    ho = (h + 2 * pad - ksize) // stride + 1
    wo = (w + 2 * pad - ksize) // stride + 1
    taps = []
    for dy in range(ksize):
        for dx in range(ksize):
            taps.append(xp[:, dy:dy + ho * stride:stride,
                           dx:dx + wo * stride:stride, :])
    col = jnp.stack(taps, axis=-2)              # (N, Ho, Wo, k*k, C)
    return col.reshape(n * ho * wo, ksize * ksize * c), (n, ho, wo)


def _w_to_mat(w_oihw):
    """PyTorch (Cout,Cin,kh,kw) conv weight -> (kh*kw*Cin, Cout) matmul weight."""
    cout, cin, kh, kw = w_oihw.shape
    return jnp.transpose(w_oihw, (2, 3, 1, 0)).reshape(kh * kw * cin, cout)


def _fold_bn(stats, m_true, gamma, beta, c_pad):
    """Tiny O(tiles*C) reduce of per-tile sums + fold BN into scale/shift.

    Note: E[y^2]-E[y]^2 in f32 can cancel for |mean| >> std; clamped to 0.
    Accuracy is within the bf16 tolerance budget used here.
    """
    g = jnp.pad(gamma.reshape(-1).astype(jnp.float32), (0, c_pad - gamma.size))
    b = jnp.pad(beta.reshape(-1).astype(jnp.float32), (0, c_pad - beta.size))
    s = jnp.sum(stats[:, 0, :], axis=0)
    ss = jnp.sum(stats[:, 1, :], axis=0)
    mean = s / m_true
    var = jnp.maximum(ss / m_true - mean * mean, 0.0)   # biased (training) var
    scale = g * lax.rsqrt(var + EPS)
    shift = b - mean * scale
    return scale.reshape(1, c_pad), shift.reshape(1, c_pad)


def init_basic_block_params(key, in_planes, planes, stride=1):
    k1, k2, k3 = jax.random.split(key, 3)
    p = {
        "w1": 0.1 * jax.random.normal(k1, (planes, in_planes, 3, 3), jnp.float32),
        "g1": jnp.ones((1, planes), jnp.float32),
        "b1": jnp.zeros((1, planes), jnp.float32),
        "w2": 0.1 * jax.random.normal(k2, (planes, planes, 3, 3), jnp.float32),
        "g2": jnp.ones((1, planes), jnp.float32),
        "b2": jnp.zeros((1, planes), jnp.float32),
        "stride": stride,
        "has_proj": (stride != 1 or in_planes != planes),
    }
    if p["has_proj"]:
        p["w_sc"] = 0.1 * jax.random.normal(k3, (planes, in_planes, 1, 1), jnp.float32)
        p["g_sc"] = jnp.ones((1, planes), jnp.float32)
        p["b_sc"] = jnp.zeros((1, planes), jnp.float32)
    return p


def basic_block_forward(x_nchw, params):
    stride = params["stride"]
    planes = params["w1"].shape[0]

    # bf16 activations for the MXU + halved im2col / intermediate HBM traffic.
    x = jnp.transpose(x_nchw, (0, 2, 3, 1)).astype(jnp.bfloat16)    # NHWC
    n, h, w, cin = x.shape
    c_pad = _round_up(planes, LANE)

    # --- conv1 (3x3, stride, pad 1) + batch stats ---
    # TODO(synk): move im2col into the conv kernel (accumulate 9 shifted tap
    # matmuls reading the padded NHWC tensor from HBM directly) to remove the
    # remaining 9x column-matrix materialization.
    xcol1, (n, ho, wo) = _im2col(x, 3, stride, 1)
    m = n * ho * wo
    tm, m_pad = _pick_m_tiling(m)

    y1, st1 = _conv_matmul_stats(xcol1, _w_to_mat(params["w1"]), m_pad, c_pad, tm)
    s1, t1 = _fold_bn(st1, m, params["g1"], params["b1"], c_pad)

    # --- bn1 + ReLU folded into conv2's input construction ---
    # Computed lazily here; XLA fuses the affine+ReLU into the im2col gather of
    # xcol2 inside the jit, so there is no separate mem-bound pass over out1.
    out1 = jnp.maximum(
        y1[:m, :planes].astype(jnp.float32) * s1[:, :planes] + t1[:, :planes],
        0.0).astype(jnp.bfloat16)
    out1_nhwc = out1.reshape(n, ho, wo, planes)

    # --- conv2 (3x3, stride 1, pad 1) + batch stats ---
    xcol2, _ = _im2col(out1_nhwc, 3, 1, 1)
    y2, st2 = _conv_matmul_stats(xcol2, _w_to_mat(params["w2"]), m_pad, c_pad, tm)
    s2, t2 = _fold_bn(st2, m, params["g2"], params["b2"], c_pad)

    # --- shortcut ---
    if params["has_proj"]:
        x_sc = x[:, ::stride, ::stride, :].reshape(m, cin)          # 1x1 conv input
        r, st_sc = _conv_matmul_stats(x_sc, _w_to_mat(params["w_sc"]),
                                      m_pad, c_pad, tm)
        rs, rt = _fold_bn(st_sc, m, params["g_sc"], params["b_sc"], c_pad)
    else:
        # Identity shortcut: only valid because has_proj covers all
        # stride!=1 / channel-mismatch cases.
        r = jnp.pad(x.reshape(m, cin), ((0, m_pad - m), (0, c_pad - cin)))
        rs = jnp.ones((1, c_pad), jnp.float32)
        rt = jnp.zeros((1, c_pad), jnp.float32)

    # --- bn2 + shortcut-BN + residual add + relu (single fused pass) ---
    out = _bn_add_act(y2, s2, t2, r, rs, rt, tm, out_dtype=jnp.float32)

    out = out[:m, :planes].reshape(n, ho, wo, planes)
    return jnp.transpose(out, (0, 3, 1, 2))                         # NCHW


# --------------------------- pure-JAX reference ----------------------------- #

def _ref_conv(x_nchw, w_oihw, stride, pad):
    return lax.conv_general_dilated(
        x_nchw, w_oihw, window_strides=(stride, stride),
        padding=((pad, pad), (pad, pad)),
        dimension_numbers=("NCHW", "OIHW", "NCHW"))


def _ref_bn(y_nchw, g, b):
    mean = jnp.mean(y_nchw, axis=(0, 2, 3), keepdims=True)
    var = jnp.mean(jnp.square(y_nchw - mean), axis=(0, 2, 3), keepdims=True)
    g = g.reshape(1, -1, 1, 1)
    b = b.reshape(1, -1, 1, 1)
    return (y_nchw - mean) * lax.rsqrt(var + EPS) * g + b


def basic_block_reference(x_nchw, p):
    out = jax.nn.relu(_ref_bn(_ref_conv(x_nchw, p["w1"], p["stride"], 1),
                              p["g1"], p["b1"]))
    out = _ref_bn(_ref_conv(out, p["w2"], 1, 1), p["g2"], p["b2"])
    if p["has_proj"]:
        short = _ref_bn(_ref_conv(x_nchw, p["w_sc"], p["stride"], 0),
                        p["g_sc"], p["b_sc"])
    else:
        short = x_nchw
    return jax.nn.relu(out + short)


# ----------------------------------- main ----------------------------------- #

if __name__ == "__main__":
    key = jax.random.PRNGKey(0)

    # (in_planes, planes, stride, spatial): projection, identity, strided.
    cases = [(4, 8, 1, 16), (8, 8, 1, 16), (4, 8, 2, 16)]
    for idx, (cin, planes, stride, hw) in enumerate(cases):
        k_in, k_par = jax.random.split(jax.random.fold_in(key, idx))
        x = jax.random.normal(k_in, (2, cin, hw, hw), jnp.float32)
        params = init_basic_block_params(k_par, cin, planes, stride)

        fwd = jax.jit(functools.partial(basic_block_forward, params=params))
        out = jax.block_until_ready(fwd(x))
        ref = jax.block_until_ready(basic_block_reference(x, params))

        assert out.shape == ref.shape, (out.shape, ref.shape)
        # bf16 matmul inputs + bf16 intermediates (f32 accumulation/stats):
        # loosened tolerance vs the f32 reference.
        max_err = float(jnp.max(jnp.abs(out - ref)))
        assert max_err < 8e-2, f"case {idx}: mismatch vs reference: {max_err}"

    print("KERNEL_OK")
</pallas_src>

<mosaic_0001>
module attributes {stable_mosaic.version = 11 : i64} {
  func.func @kernel(%arg0: i32, %arg1: i32, %arg2: memref<256x128xbf16, #tpu.memory_space<vmem>>, %arg3: memref<128x128xbf16, #tpu.memory_space<vmem>>, %arg4: memref<256x128xbf16, #tpu.memory_space<vmem>>, %arg5: memref<1x2x128xf32, #tpu.memory_space<vmem>>, %arg6: memref<256x128xf32, #tpu.memory_space<vmem>>) attributes {dimension_semantics = [#tpu.dimension_semantics<parallel>, #tpu.dimension_semantics<arbitrary>], iteration_bounds = array<i64: 2, 1>, scalar_prefetch = 0 : i64, scratch_operands = 1 : i64, tpu.core_type = #tpu.core_type<tc>, window_params = [{transform_indices = @transform_0, window_bounds = array<i64: 256, 128>}, {pipeline_mode = #tpu.pipeline_mode<synchronous>, transform_indices = @transform_1, window_bounds = array<i64: 128, 128>}, {transform_indices = @transform_2, window_bounds = array<i64: 256, 128>}, {transform_indices = @transform_3, window_bounds = array<i64: 1, 2, 128>}]} {
    %c0_i32 = arith.constant 0 : i32
    %0 = arith.cmpi eq, %arg1, %c0_i32 : i32
    %1 = arith.extui %0 : i1 to i32
    %c0_i32_0 = arith.constant 0 : i32
    %2 = arith.cmpi ne, %1, %c0_i32_0 : i32
    scf.if %2 {
      %cst_9 = arith.constant 0.000000e+00 : f32
      %15 = vector.broadcast %cst_9 : f32 to vector<256x128xf32>
      %c0_10 = arith.constant 0 : index
      %c0_11 = arith.constant 0 : index
      %16 = vector.load %arg6[%c0_10, %c0_11] : memref<256x128xf32, #tpu.memory_space<vmem>>, vector<256x128xf32>
      tpu.vector_store %arg6[%c0_10, %c0_11], %15 {strides = array<i32>} : memref<256x128xf32, #tpu.memory_space<vmem>>, vector<256x128xf32>,
    } else {
    }
    %c128_i32 = arith.constant 128 : i32
    %3 = arith.muli %arg1, %c128_i32 : i32
    %4 = tpu.assume_multiple %3, 128 : i32
    %c0 = arith.constant 0 : index
    %c0_1 = arith.constant 0 : index
    %5 = vector.load %arg6[%c0, %c0_1] : memref<256x128xf32, #tpu.memory_space<vmem>>, vector<256x128xf32>
    %c0_2 = arith.constant 0 : index
    %c0_3 = arith.constant 0 : index
    %6 = vector.load %arg2[%c0_2, %c0_3] : memref<256x128xbf16, #tpu.memory_space<vmem>>, vector<256x128xbf16>
    %7 = arith.index_cast %4 : i32 to index
    %c0_4 = arith.constant 0 : index
    %8 = vector.load %arg3[%7, %c0_4] : memref<128x128xbf16, #tpu.memory_space<vmem>>, vector<128x128xbf16>
    %cst = arith.constant dense<0.000000e+00> : vector<256x128xf32>
    %9 = tpu.matmul %6, %8, %cst {dimension_numbers = #tpu.dot_dimension_numbers<[1], [0], [0], [1], [0, 0, 1, 1], [], []>} : vector<256x128xbf16>, vector<128x128xbf16>, vector<256x128xf32> -> vector<256x128xf32>
    %10 = arith.addf %5, %9 : vector<256x128xf32>
    %c0_5 = arith.constant 0 : index
    %c0_6 = arith.constant 0 : index
    %11 = vector.load %arg6[%c0_5, %c0_6] : memref<256x128xf32, #tpu.memory_space<vmem>>, vector<256x128xf32>
    tpu.vector_store %arg6[%c0_5, %c0_6], %10 {strides = array<i32>} : memref<256x128xf32, #tpu.memory_space<vmem>>, vector<256x128xf32>,
    %c0_i32_7 = arith.constant 0 : i32
    %12 = arith.cmpi eq, %arg1, %c0_i32_7 : i32
    %13 = arith.extui %12 : i1 to i32
    %c0_i32_8 = arith.constant 0 : i32
    %14 = arith.cmpi ne, %13, %c0_i32_8 : i32
    scf.if %14 {
      %c0_9 = arith.constant 0 : index
      %c0_10 = arith.constant 0 : index
      %15 = vector.load %arg6[%c0_9, %c0_10] : memref<256x128xf32, #tpu.memory_space<vmem>>, vector<256x128xf32>
      %16 = arith.truncf %15 : vector<256x128xf32> to vector<256x128xbf16>
      %c0_11 = arith.constant 0 : index
      %c0_12 = arith.constant 0 : index
      %17 = vector.load %arg4[%c0_11, %c0_12] : memref<256x128xbf16, #tpu.memory_space<vmem>>, vector<256x128xbf16>
      tpu.vector_store %arg4[%c0_11, %c0_12], %16 {strides = array<i32>} : memref<256x128xbf16, #tpu.memory_space<vmem>>, vector<256x128xbf16>,
      %cst_13 = arith.constant dense<0.000000e+00> : vector<128xf32>
      %18 = vector.multi_reduction <add>, %15, %cst_13 [0] : vector<256x128xf32> to vector<128xf32>
      %19 = vector.shape_cast %18 : vector<128xf32> to vector<1x128xf32>
      %c0_14 = arith.constant 0 : index
      %c0_15 = arith.constant 0 : index
      %c0_16 = arith.constant 0 : index
      %20 = vector.load %arg5[%c0_14, %c0_15, %c0_16] : memref<1x2x128xf32, #tpu.memory_space<vmem>>, vector<1x1x128xf32>
      %21 = vector.shape_cast %20 : vector<1x1x128xf32> to vector<1x128xf32>
      %22 = vector.shape_cast %19 : vector<1x128xf32> to vector<1x1x128xf32>
      tpu.vector_store %arg5[%c0_14, %c0_15, %c0_16], %22 {strides = array<i32>} : memref<1x2x128xf32, #tpu.memory_space<vmem>>, vector<1x1x128xf32>,
      %23 = arith.mulf %15, %15 : vector<256x128xf32>
      %cst_17 = arith.constant dense<0.000000e+00> : vector<128xf32>
      %24 = vector.multi_reduction <add>, %23, %cst_17 [0] : vector<256x128xf32> to vector<128xf32>
      %25 = vector.shape_cast %24 : vector<128xf32> to vector<1x128xf32>
      %c0_18 = arith.constant 0 : index
      %c1 = arith.constant 1 : index
      %c0_19 = arith.constant 0 : index
      %26 = vector.load %arg5[%c0_18, %c1, %c0_19] : memref<1x2x128xf32, #tpu.memory_space<vmem>>, vector<1x1x128xf32>
      %27 = vector.shape_cast %26 : vector<1x1x128xf32> to vector<1x128xf32>
      %28 = vector.shape_cast %25 : vector<1x128xf32> to vector<1x1x128xf32>
      tpu.vector_store %arg5[%c0_18, %c1, %c0_19], %28 {strides = array<i32>} : memref<1x2x128xf32, #tpu.memory_space<vmem>>, vector<1x1x128xf32>,
    } else {
    }
    return
  }
  func.func @transform_0(%arg0: i32, %arg1: i32) -> (i32, i32) {
    %c0_i32 = arith.constant 0 : i32
    return %arg0, %arg1 : i32, i32
  }
  func.func @transform_1(%arg0: i32, %arg1: i32) -> (i32, i32) {
    %c0_i32 = arith.constant 0 : i32
    %c0_i32_0 = arith.constant 0 : i32
    %c0_i32_1 = arith.constant 0 : i32
    return %c0_i32, %c0_i32_0 : i32, i32
  }
  func.func @transform_2(%arg0: i32, %arg1: i32) -> (i32, i32) {
    %c0_i32 = arith.constant 0 : i32
    %c0_i32_0 = arith.constant 0 : i32
    return %arg0, %c0_i32 : i32, i32
  }
  func.func @transform_3(%arg0: i32, %arg1: i32) -> (i32, i32, i32) {
    %c0_i32 = arith.constant 0 : i32
    %c0_i32_0 = arith.constant 0 : i32
    %c0_i32_1 = arith.constant 0 : i32
    return %arg0, %c0_i32, %c0_i32_0 : i32, i32, i32
  }
}

module attributes {stable_mosaic.version = 11 : i64} {
  func.func @bn_add_bn_relu_kernel(%arg0: i32, %arg1: memref<256x128xbf16, #tpu.memory_space<vmem>>, %arg2: memref<1x128xf32, #tpu.memory_space<vmem>>, %arg3: memref<1x128xf32, #tpu.memory_space<vmem>>, %arg4: memref<256x128xbf16, #tpu.memory_space<vmem>>, %arg5: memref<1x128xf32, #tpu.memory_space<vmem>>, %arg6: memref<1x128xf32, #tpu.memory_space<vmem>>, %arg7: memref<256x128xf32, #tpu.memory_space<vmem>>) attributes {dimension_semantics = [#tpu.dimension_semantics<parallel>], iteration_bounds = array<i64: 2>, scalar_prefetch = 0 : i64, scratch_operands = 0 : i64, tpu.core_type = #tpu.core_type<tc>, window_params = [{transform_indices = @transform_0, window_bounds = array<i64: 256, 128>}, {pipeline_mode = #tpu.pipeline_mode<synchronous>, transform_indices = @transform_1, window_bounds = array<i64: 1, 128>}, {pipeline_mode = #tpu.pipeline_mode<synchronous>, transform_indices = @transform_2, window_bounds = array<i64: 1, 128>}, {transform_indices = @transform_3, window_bounds = array<i64: 256, 128>}, {pipeline_mode = #tpu.pipeline_mode<synchronous>, transform_indices = @transform_4, window_bounds = array<i64: 1, 128>}, {pipeline_mode = #tpu.pipeline_mode<synchronous>, transform_indices = @transform_5, window_bounds = array<i64: 1, 128>}, {transform_indices = @transform_6, window_bounds = array<i64: 256, 128>}]} {
    %c0 = arith.constant 0 : index
    %c0_0 = arith.constant 0 : index
    %0 = vector.load %arg1[%c0, %c0_0] : memref<256x128xbf16, #tpu.memory_space<vmem>>, vector<256x128xbf16>
    %1 = arith.extf %0 : vector<256x128xbf16> to vector<256x128xf32>
    %c0_1 = arith.constant 0 : index
    %c0_2 = arith.constant 0 : index
    %2 = vector.load %arg2[%c0_1, %c0_2] : memref<1x128xf32, #tpu.memory_space<vmem>>, vector<1x128xf32>
    %3 = vector.broadcast %2 : vector<1x128xf32> to vector<256x128xf32>
    %4 = arith.mulf %1, %3 : vector<256x128xf32>
    %c0_3 = arith.constant 0 : index
    %c0_4 = arith.constant 0 : index
    %5 = vector.load %arg3[%c0_3, %c0_4] : memref<1x128xf32, #tpu.memory_space<vmem>>, vector<1x128xf32>
    %6 = vector.broadcast %5 : vector<1x128xf32> to vector<256x128xf32>
    %7 = arith.addf %4, %6 : vector<256x128xf32>
    %c0_5 = arith.constant 0 : index
    %c0_6 = arith.constant 0 : index
    %8 = vector.load %arg4[%c0_5, %c0_6] : memref<256x128xbf16, #tpu.memory_space<vmem>>, vector<256x128xbf16>
    %9 = arith.extf %8 : vector<256x128xbf16> to vector<256x128xf32>
    %c0_7 = arith.constant 0 : index
    %c0_8 = arith.constant 0 : index
    %10 = vector.load %arg5[%c0_7, %c0_8] : memref<1x128xf32, #tpu.memory_space<vmem>>, vector<1x128xf32>
    %11 = vector.broadcast %10 : vector<1x128xf32> to vector<256x128xf32>
    %12 = arith.mulf %9, %11 : vector<256x128xf32>
    %c0_9 = arith.constant 0 : index
    %c0_10 = arith.constant 0 : index
    %13 = vector.load %arg6[%c0_9, %c0_10] : memref<1x128xf32, #tpu.memory_space<vmem>>, vector<1x128xf32>
    %14 = vector.broadcast %13 : vector<1x128xf32> to vector<256x128xf32>
    %15 = arith.addf %12, %14 : vector<256x128xf32>
    %16 = arith.addf %7, %15 : vector<256x128xf32>
    %cst = arith.constant 0.000000e+00 : f32
    %17 = vector.broadcast %cst : f32 to vector<256x128xf32>
    %18 = arith.maximumf %16, %17 : vector<256x128xf32>
    %c0_11 = arith.constant 0 : index
    %c0_12 = arith.constant 0 : index
    %19 = vector.load %arg7[%c0_11, %c0_12] : memref<256x128xf32, #tpu.memory_space<vmem>>, vector<256x128xf32>
    tpu.vector_store %arg7[%c0_11, %c0_12], %18 {strides = array<i32>} : memref<256x128xf32, #tpu.memory_space<vmem>>, vector<256x128xf32>,
    return
  }
  func.func @transform_0(%arg0: i32) -> (i32, i32) {
    %c0_i32 = arith.constant 0 : i32
    %c0_i32_0 = arith.constant 0 : i32
    return %arg0, %c0_i32 : i32, i32
  }
  func.func @transform_1(%arg0: i32) -> (i32, i32) {
    %c0_i32 = arith.constant 0 : i32
    %c0_i32_0 = arith.constant 0 : i32
    %c0_i32_1 = arith.constant 0 : i32
    return %c0_i32, %c0_i32_0 : i32, i32
  }
  func.func @transform_2(%arg0: i32) -> (i32, i32) {
    %c0_i32 = arith.constant 0 : i32
    %c0_i32_0 = arith.constant 0 : i32
    %c0_i32_1 = arith.constant 0 : i32
    return %c0_i32, %c0_i32_0 : i32, i32
  }
  func.func @transform_3(%arg0: i32) -> (i32, i32) {
    %c0_i32 = arith.constant 0 : i32
    %c0_i32_0 = arith.constant 0 : i32
    return %arg0, %c0_i32 : i32, i32
  }
  func.func @transform_4(%arg0: i32) -> (i32, i32) {
    %c0_i32 = arith.constant 0 : i32
    %c0_i32_0 = arith.constant 0 : i32
    %c0_i32_1 = arith.constant 0 : i32
    return %c0_i32, %c0_i32_0 : i32, i32
  }
  func.func @transform_5(%arg0: i32) -> (i32, i32) {
    %c0_i32 = arith.constant 0 : i32
    %c0_i32_0 = arith.constant 0 : i32
    %c0_i32_1 = arith.constant 0 : i32
    return %c0_i32, %c0_i32_0 : i32, i32
  }
  func.func @transform_6(%arg0: i32) -> (i32, i32) {
    %c0_i32 = arith.constant 0 : i32
    %c0_i32_0 = arith.constant 0 : i32
    return %arg0, %c0_i32 : i32, i32
  }
}

</mosaic_0001>

<bundles_post_ra>
// kernel: basic_block_forward.4
= control target key start
LH: loop header
LB: loop body
LE: loop exit
PB: predicated region body
PF: predicated region fallthrough
CT: control target
= control target key end

     0   :  { %s1478_s12 = smov 0   ;;  %s1480_s13 = smov 0   ;;  %s1670_s0 = inlined_call_operand.vmem [shape: bf16[512,128], index: 0, kind: input, shape index: {}]   ;;  %s1671_s1 = inlined_call_operand.vmem [shape: bf16[128,128], index: 1, kind: input, shape index: {}]   ;;  %s1672_s2 = inlined_call_operand.vmem [shape: bf16[512,128], index: 2, kind: output, shape index: {0}]   ;;  %s1673_s3 = inlined_call_operand.vmem [shape: f32[2,2,128], index: 3, kind: output, shape index: {1}]  }
   0x1   :  { %s1482_s14 = smov 0  }
   0x2 LB: > { %s26_s15 = sadd.s32 1, %s1452_s13  ;;  %p1107_p0 = scmp.ge.s32.totalorder %s1456_s14, 1  ;;  %s1456_s14 = sphi %s1482_s14, %s14_s14   ;;  %s1452_s13 = sphi %s1480_s13, %s1675_s13   ;;  %s1448_s12 = sphi %s1478_s12, %s1674_s12  }
   0x3   : > { %p28_p1 = scmp.ge.s32.totalorder %s26_s15, 2  ;;  %p158_p2 = scmp.lt.s32.totalorder %s1456_s14, 3 }
   0x5   : > { %s1677_s15 = smov (%p28_p1, %s26_s15), 0  ;;  %p159_p3 = pnand %p1107_p0, %p158_p2 }
   0x6   : > { %v1410_v0 = vld [vmem:[%s1671_s1] sm:$0xff] (!%p159_p3)   ;;  %s1108_s18 = sshll.u32 (!%p159_p3), %s1448_s12, 5  ;;  %v1411_v1 = vld [vmem:[%s1671_s1 + $0x8] sm:$0xff] (!%p159_p3)   ;;  %v1412_v2 = vld [vmem:[%s1671_s1 + $0x10] sm:$0xff] (!%p159_p3)   ;;  %p204_p5 = scmp.lt.s32.totalorder (!%p159_p3), %s1448_s12, 1 }
   0x7   : > { %162 = sbr.rel (%p159_p3) target bundleno = 331 (0x14b), region = 28  ;;  %p190_p4 = scmp.lt.s32.totalorder (!%p159_p3), %s1108_s18, 63  ;;  %1322 = vmatprep.subr.bf16.mxu0 (!%p159_p3), %v1410_v0  ;;  %1370 = vmatprep.subr.bf16.mxu1 (!%p159_p3), %v1410_v0  ;;  %v1413_v3 = vld [vmem:[%s1671_s1 + $0x18] sm:$0xff] (!%p159_p3)   ;;  %v1414_v5 = vld [vmem:[%s1671_s1 + $0x20] sm:$0xff] (!%p159_p3)   ;;  %v1415_v6 = vld [vmem:[%s1671_s1 + $0x28] sm:$0xff] (!%p159_p3)  }
   0x8   : > { %1323 = vmatpush3.bf16.msra.mxu0 (!%p159_p3), %v1410_v0  ;;  %1378 = vmatpush3.bf16.msra.mxu1 (!%p159_p3), %v1410_v0  ;;  %v1416_v8 = vld [vmem:[%s1671_s1 + $0x30] sm:$0xff] (!%p159_p3)   ;;  %v1417_v9 = vld [vmem:[%s1671_s1 + $0x38] sm:$0xff] (!%p159_p3)  }
   0x9   : > { %1324 = vmatprep.subr.bf16.mxu0 (!%p159_p3), %v1411_v1  ;;  %1371 = vmatprep.subr.bf16.mxu1 (!%p159_p3), %v1411_v1 }
   0xc   : > { %1325 = vmatpush3.bf16.msra.mxu0 (!%p159_p3), %v1411_v1  ;;  %1379 = vmatpush3.bf16.msra.mxu1 (!%p159_p3), %v1411_v1 }
   0xd   : > { %1326 = vmatprep.subr.bf16.mxu0 (!%p159_p3), %v1412_v2  ;;  %1372 = vmatprep.subr.bf16.mxu1 (!%p159_p3), %v1412_v2 }
   0xe   : > { %s1679_s18 = smov (!%p190_p4, %s1108_s18), 63  ;;  %s1681_s12 = smov (!%p204_p5, %s1448_s12), 1 }
   0xf   : > { %s1109_s23 = sshll.u32 %s1679_s18, 2  ;;  %s1112_s17 = sshll.u32 %s1681_s12, 1 }
  0x10   : > { %s1516_s26 = scalar_lea.vmem %s1670_s0, %s1109_s23  ;;  %1327 = vmatpush3.bf16.msra.mxu0 %v1412_v2  ;;  %1380 = vmatpush3.bf16.msra.mxu1 %v1412_v2  ;;  %s1558_s16 = scalar_lea.vmem %s1672_s2, %s1109_s23 }
  0x11   : > { %v1418_v4 = vld [vmem:[%s1516_s26] sm:$0xff]   ;;  %1328 = vmatprep.subr.bf16.mxu0 %v1413_v3  ;;  %1373 = vmatprep.subr.bf16.mxu1 %v1413_v3  ;;  %v1419_v10 = vld [vmem:[%s1516_s26 + $0x8] sm:$0xff]   ;;  %v1420_v12 = vld [vmem:[%s1516_s26 + $0x10] sm:$0xff]   ;;  %s207_s20 = scalar_lea.vmem %s1673_s3, %s1112_s17 }
  0x12   : > { %1338 = vmatprep.mubr.bf16.mxu0 %v1418_v4  ;;  %v1426_v7 = vld [vmem:[%s1516_s26 + $0x40] sm:$0xff]   ;;  %v1427_v11 = vld [vmem:[%s1516_s26 + $0x48] sm:$0xff]   ;;  %v1428_v13 = vld [vmem:[%s1516_s26 + $0x50] sm:$0xff]  }
  0x13   : > { %1354 = vmatprep.mubr.bf16.mxu1 %v1426_v7  ;;  %v1421_v14 = vld [vmem:[%s1516_s26 + $0x18] sm:$0xff]   ;;  %v1422_v16 = vld [vmem:[%s1516_s26 + $0x20] sm:$0xff]   ;;  %v1423_v18 = vld [vmem:[%s1516_s26 + $0x28] sm:$0xff]  }
  0x14   : > { %1329 = vmatpush3.bf16.msra.mxu0 %v1413_v3  ;;  %1381 = vmatpush3.bf16.msra.mxu1 %v1413_v3  ;;  %v1429_v15 = vld [vmem:[%s1516_s26 + $0x58] sm:$0xff]   ;;  %v1430_v17 = vld [vmem:[%s1516_s26 + $0x60] sm:$0xff]   ;;  %v1431_v19 = vld [vmem:[%s1516_s26 + $0x68] sm:$0xff]  }
  0x15   : > { %1330 = vmatprep.subr.bf16.mxu0 %v1414_v5  ;;  %1374 = vmatprep.subr.bf16.mxu1 %v1414_v5  ;;  %v1424_v20 = vld [vmem:[%s1516_s26 + $0x30] sm:$0xff]   ;;  %v1425_v22 = vld [vmem:[%s1516_s26 + $0x38] sm:$0xff]  }
  0x16   : > { %v1432_v21 = vld [vmem:[%s1516_s26 + $0x70] sm:$0xff]   ;;  %v1433_v23 = vld [vmem:[%s1516_s26 + $0x78] sm:$0xff]  }
  0x18   : > { %1331 = vmatpush3.bf16.msra.mxu0 %v1414_v5  ;;  %1382 = vmatpush3.bf16.msra.mxu1 %v1414_v5 }
  0x19   : > { %1332 = vmatprep.subr.bf16.mxu0 %v1415_v6  ;;  %1375 = vmatprep.subr.bf16.mxu1 %v1415_v6 }
  0x1c   : > { %1333 = vmatpush3.bf16.msra.mxu0 %v1415_v6  ;;  %1383 = vmatpush3.bf16.msra.mxu1 %v1415_v6 }
  0x1d   : > { %1334 = vmatprep.subr.bf16.mxu0 %v1416_v8  ;;  %1376 = vmatprep.subr.bf16.mxu1 %v1416_v8 }
  0x20   : > { %1335 = vmatpush3.bf16.msra.mxu0 %v1416_v8  ;;  %1384 = vmatpush3.bf16.msra.mxu1 %v1416_v8 }
  0x21   : > { %1336 = vmatprep.subr.bf16.mxu0 %v1417_v9  ;;  %1377 = vmatprep.subr.bf16.mxu1 %v1417_v9 }
  0x24   : > { %1337 = vmatpush3.bf16.msra.mxu0 %v1417_v9  ;;  %1385 = vmatpush3.bf16.msra.mxu1 %v1417_v9 }
  0x27   : > { %1339 = vmatmul.mubr.bf16.vlgmr.msra.gmra.mrb[0].mxu0 %v1419_v10  ;;  %1355 = vmatmul.mubr.bf16.vlgmr.msra.gmra.mrb[0].mxu1 %v1427_v11 }
  0x28   : > { %1342 = vmatprep.mubr.bf16.mxu0 %v1420_v12  ;;  %1358 = vmatprep.mubr.bf16.mxu1 %v1428_v13 }
  0x2f   : > { %1343 = vmatmul.mubr.bf16.gmra.mrb[4].mxu0 %v1421_v14  ;;  %1359 = vmatmul.mubr.bf16.gmra.mrb[4].mxu1 %v1429_v15 }
  0x30   : > { %1346 = vmatprep.mubr.bf16.mxu0 %v1422_v16  ;;  %1362 = vmatprep.mubr.bf16.mxu1 %v1430_v17 }
  0x37   : > { %1347 = vmatmul.mubr.bf16.gmra.mrb[8].mxu0 %v1423_v18  ;;  %1363 = vmatmul.mubr.bf16.gmra.mrb[8].mxu1 %v1431_v19 }
  0x38   : > { %1350 = vmatprep.mubr.bf16.mxu0 %v1424_v20  ;;  %1366 = vmatprep.mubr.bf16.mxu1 %v1432_v21 }
  0x3f   : > { %1351 = vmatmul.mubr.bf16.gmra.mrb[12].mxu0 %v1425_v22  ;;  %1367 = vmatmul.mubr.bf16.gmra.mrb[12].mxu1 %v1433_v23 }
  0xfa   : > { %v1340_v24 = vpop.f32.mrb[0].mxu0  ;;  %v1549_v25 = vpop.f32.mrb[0].mxu1 }
  0xfb   : > { %v508_v26 = vpop.f32.mrb[1].mxu0  ;;  %v1551_v27 = vpop.f32.mrb[1].mxu1  ;;  %v934_v39 = vmul.f32 %v1340_v24, %v1340_v24 }
  0xfc   : > { %v1341_v28 = vpop.f32.mrb[2].mxu0  ;;  %v1560_v29 = vpop.f32.mrb[2].mxu1  ;;  %v932_v30 = vmul.f32 %v508_v26, %v508_v26 }
  0xfd   : > { %v1211_v31 = vpack.c.bf16 %v1341_v28, %v1340_v24  ;;  %v511_v32 = vpop.f32.mrb[3].mxu0  ;;  %v1251_v33 = vpack.c.bf16 %v1560_v29, %v1549_v25  ;;  %v1564_v34 = vpop.f32.mrb[3].mxu1  ;;  %v935_v42 = vmul.f32 %v1341_v28, %v1341_v28 }
  0xfe   : > { %v1206_v35 = vpack.c.bf16 %v511_v32, %v508_v26  ;;  %v894_v36 = vadd.f32 %v511_v32, %v508_v26  ;;  %v933_v37 = vmul.f32 %v511_v32, %v511_v32  ;;  %v1246_v38 = vpack.c.bf16 %v1564_v34, %v1551_v27 }
  0xff   : > { %1283 = vst [vmem:[%s1558_s16 + $0x8] sm:$0xff] %v1211_v31   ;;  %1291 = vst [vmem:[%s1558_s16 + $0x48] sm:$0xff] %v1251_v33  }
 0x100   : > { %1207 = vst [vmem:[%s1558_s16] sm:$0xff] %v1206_v35   ;;  %v895_v40 = vadd.f32 %v1340_v24, %v894_v36  ;;  %v964_v41 = vadd.f32 %v933_v37, %v932_v30  ;;  %1290 = vst [vmem:[%s1558_s16 + $0x40] sm:$0xff] %v1246_v38  }
 0x102   : > { %v965_v43 = vadd.f32 %v964_v41, %v934_v39  ;;  %v1344_v44 = vpop.f32.mrb[4].mxu0  ;;  %v896_v45 = vadd.f32 %v1341_v28, %v895_v40  ;;  %v1572_v46 = vpop.f32.mrb[4].mxu1 }
 0x103   : > { %v524_v47 = vpop.f32.mrb[5].mxu0  ;;  %v1574_v48 = vpop.f32.mrb[5].mxu1  ;;  %v938_v63 = vmul.f32 %v1344_v44, %v1344_v44 }
 0x104   : > { %v897_v49 = vadd.f32 %v896_v45, %v524_v47  ;;  %v936_v50 = vmul.f32 %v524_v47, %v524_v47  ;;  %v966_v51 = vadd.f32 %v965_v43, %v935_v42  ;;  %v1345_v52 = vpop.f32.mrb[6].mxu0  ;;  %v1576_v53 = vpop.f32.mrb[6].mxu1 }
 0x105   : > { %v1221_v54 = vpack.c.bf16 %v1345_v52, %v1344_v44  ;;  %v527_v55 = vpop.f32.mrb[7].mxu0  ;;  %v1261_v56 = vpack.c.bf16 %v1576_v53, %v1572_v46  ;;  %v1580_v57 = vpop.f32.mrb[7].mxu1  ;;  %v939_v2 = vmul.f32 %v1345_v52, %v1345_v52 }
 0x106   : > { %v967_v58 = vadd.f32 %v966_v51, %v936_v50  ;;  %v1216_v59 = vpack.c.bf16 %v527_v55, %v524_v47  ;;  %v898_v60 = vadd.f32 %v897_v49, %v527_v55  ;;  %v937_v61 = vmul.f32 %v527_v55, %v527_v55 }
 0x107   : > { %1285 = vst [vmem:[%s1558_s16 + $0x18] sm:$0xff] %v1221_v54   ;;  %1293 = vst [vmem:[%s1558_s16 + $0x58] sm:$0xff] %v1261_v56   ;;  %v1256_v62 = vpack.c.bf16 %v1580_v57, %v1574_v48 }
 0x108   : > { %1284 = vst [vmem:[%s1558_s16 + $0x10] sm:$0xff] %v1216_v59   ;;  %v899_v0 = vadd.f32 %v1344_v44, %v898_v60  ;;  %v968_v1 = vadd.f32 %v967_v58, %v937_v61  ;;  %v948_v61 = vmul.f32 %v1551_v27, %v1551_v27 }
 0x109   : > { %1292 = vst [vmem:[%s1558_s16 + $0x50] sm:$0xff] %v1256_v62  }
 0x10a   : > { %v969_v3 = vadd.f32 %v968_v1, %v938_v63  ;;  %v1348_v4 = vpop.f32.mrb[8].mxu0  ;;  %v900_v5 = vadd.f32 %v1345_v52, %v899_v0  ;;  %v1588_v6 = vpop.f32.mrb[8].mxu1 }
 0x10b   : > { %v540_v7 = vpop.f32.mrb[9].mxu0  ;;  %v1590_v8 = vpop.f32.mrb[9].mxu1  ;;  %v942_v23 = vmul.f32 %v1348_v4, %v1348_v4 }
 0x10c   : > { %v901_v9 = vadd.f32 %v900_v5, %v540_v7  ;;  %v940_v10 = vmul.f32 %v540_v7, %v540_v7  ;;  %v970_v11 = vadd.f32 %v969_v3, %v939_v2  ;;  %v1349_v12 = vpop.f32.mrb[10].mxu0  ;;  %v1592_v13 = vpop.f32.mrb[10].mxu1  ;;  %v949_v2 = vmul.f32 %v1564_v34, %v1564_v34 }
 0x10d   : > { %v1231_v14 = vpack.c.bf16 %v1349_v12, %v1348_v4  ;;  %v543_v15 = vpop.f32.mrb[11].mxu0  ;;  %v1271_v16 = vpack.c.bf16 %v1592_v13, %v1588_v6  ;;  %v1596_v17 = vpop.f32.mrb[11].mxu1  ;;  %v943_v28 = vmul.f32 %v1349_v12, %v1349_v12  ;;  %v950_v3 = vmul.f32 %v1549_v25, %v1549_v25 }
 0x10e   : > { %v971_v18 = vadd.f32 %v970_v11, %v940_v10  ;;  %v1226_v19 = vpack.c.bf16 %v543_v15, %v540_v7  ;;  %v902_v20 = vadd.f32 %v901_v9, %v543_v15  ;;  %v941_v21 = vmul.f32 %v543_v15, %v543_v15 }
 0x10f   : > { %1287 = vst [vmem:[%s1558_s16 + $0x28] sm:$0xff] %v1231_v14   ;;  %1295 = vst [vmem:[%s1558_s16 + $0x68] sm:$0xff] %v1271_v16   ;;  %v1266_v22 = vpack.c.bf16 %v1596_v17, %v1590_v8  ;;  %v951_v7 = vmul.f32 %v1560_v29, %v1560_v29  ;;  %v953_v15 = vmul.f32 %v1580_v57, %v1580_v57 }
 0x110   : > { %1286 = vst [vmem:[%s1558_s16 + $0x20] sm:$0xff] %v1226_v19   ;;  %v903_v24 = vadd.f32 %v1348_v4, %v902_v20  ;;  %v972_v26 = vadd.f32 %v971_v18, %v941_v21 }
 0x111   : > { %1294 = vst [vmem:[%s1558_s16 + $0x60] sm:$0xff] %v1266_v22  }
 0x112   : > { %v973_v30 = vadd.f32 %v972_v26, %v942_v23  ;;  %v1352_v31 = vpop.f32.mrb[12].mxu0  ;;  %v904_v32 = vadd.f32 %v1349_v12, %v903_v24  ;;  %v1604_v33 = vpop.f32.mrb[12].mxu1  ;;  %v957_v24 = vmul.f32 %v1596_v17, %v1596_v17 }
 0x113   : > { %v556_v35 = vpop.f32.mrb[13].mxu0  ;;  %v620_v36 = vpop.f32.mrb[13].mxu1  ;;  %v946_v54 = vmul.f32 %v1352_v31, %v1352_v31 }
 0x114   : > { %v905_v37 = vadd.f32 %v904_v32, %v556_v35  ;;  %v944_v38 = vmul.f32 %v556_v35, %v556_v35  ;;  %v974_v39 = vadd.f32 %v973_v30, %v943_v28  ;;  %v1353_v40 = vpop.f32.mrb[14].mxu0  ;;  %v1606_v41 = vpop.f32.mrb[14].mxu1 }
 0x115   : > { %v1241_v42 = vpack.c.bf16 %v1353_v40, %v1352_v31  ;;  %v559_v43 = vpop.f32.mrb[15].mxu0  ;;  %v1281_v44 = vpack.c.bf16 %v1606_v41, %v1604_v33  ;;  %v623_v45 = vpop.f32.mrb[15].mxu1  ;;  %v947_v58 = vmul.f32 %v1353_v40, %v1353_v40 }
 0x116   : > { %v975_v47 = vadd.f32 %v974_v39, %v944_v38  ;;  %v1236_v49 = vpack.c.bf16 %v559_v43, %v556_v35  ;;  %v906_v50 = vadd.f32 %v905_v37, %v559_v43  ;;  %v945_v51 = vmul.f32 %v559_v43, %v559_v43 }
 0x117   : > { %1289 = vst [vmem:[%s1558_s16 + $0x38] sm:$0xff] %v1241_v42   ;;  %1297 = vst [vmem:[%s1558_s16 + $0x78] sm:$0xff] %v1281_v44   ;;  %v1276_v52 = vpack.c.bf16 %v623_v45, %v620_v36  ;;  %v962_v39 = vmul.f32 %v1604_v33, %v1604_v33  ;;  %v963_v42 = vmul.f32 %v1606_v41, %v1606_v41 }
 0x118   : > { %1288 = vst [vmem:[%s1558_s16 + $0x30] sm:$0xff] %v1236_v49   ;;  %v907_v55 = vadd.f32 %v1352_v31, %v906_v50  ;;  %v976_v56 = vadd.f32 %v975_v47, %v945_v51  ;;  %v960_v31 = vmul.f32 %v620_v36, %v620_v36 }
 0x119   : > { %1296 = vst [vmem:[%s1558_s16 + $0x70] sm:$0xff] %v1276_v52  }
 0x11a   : > { %v977_v59 = vadd.f32 %v976_v56, %v946_v54  ;;  %v908_v60 = vadd.f32 %v1353_v40, %v907_v55 }
 0x11c   : > { %v909_v62 = vadd.f32 %v908_v60, %v1551_v27  ;;  %v978_v63 = vadd.f32 %v977_v59, %v947_v58  ;;  %v952_v27 = vmul.f32 %v1574_v48, %v1574_v48 }
 0x11e   : > { %v979_v0 = vadd.f32 %v978_v63, %v948_v61  ;;  %v910_v1 = vadd.f32 %v909_v62, %v1564_v34 }
 0x120   : > { %v911_v4 = vadd.f32 %v1549_v25, %v910_v1  ;;  %v980_v5 = vadd.f32 %v979_v0, %v949_v2  ;;  %v954_v25 = vmul.f32 %v1572_v46, %v1572_v46 }
 0x122   : > { %v981_v9 = vadd.f32 %v980_v5, %v950_v3  ;;  %v912_v10 = vadd.f32 %v1560_v29, %v911_v4  ;;  %v955_v29 = vmul.f32 %v1576_v53, %v1576_v53 }
 0x124   : > { %v913_v11 = vadd.f32 %v912_v10, %v1574_v48  ;;  %v982_v12 = vadd.f32 %v981_v9, %v951_v7  ;;  %v956_v48 = vmul.f32 %v1590_v8, %v1590_v8 }
 0x126   : > { %v983_v14 = vadd.f32 %v982_v12, %v952_v27  ;;  %v914_v34 = vadd.f32 %v913_v11, %v1580_v57 }
 0x128   : > { %v915_v16 = vadd.f32 %v1572_v46, %v914_v34  ;;  %v984_v18 = vadd.f32 %v983_v14, %v953_v15  ;;  %v958_v46 = vmul.f32 %v1588_v6, %v1588_v6 }
 0x12a   : > { %v985_v19 = vadd.f32 %v984_v18, %v954_v25  ;;  %v916_v20 = vadd.f32 %v1576_v53, %v915_v16  ;;  %v959_v53 = vmul.f32 %v1592_v13, %v1592_v13 }
 0x12c   : > { %v917_v21 = vadd.f32 %v916_v20, %v1590_v8  ;;  %v986_v22 = vadd.f32 %v985_v19, %v955_v29 }
 0x12e   : > { %v987_v23 = vadd.f32 %v986_v22, %v956_v48  ;;  %v918_v57 = vadd.f32 %v917_v21, %v1596_v17  ;;  %v961_v17 = vmul.f32 %v623_v45, %v623_v45 }
 0x130   : > { %v919_v26 = vadd.f32 %v1588_v6, %v918_v57  ;;  %v988_v28 = vadd.f32 %v987_v23, %v957_v24 }
 0x132   : > { %v989_v30 = vadd.f32 %v988_v28, %v958_v46  ;;  %v920_v8 = vadd.f32 %v1592_v13, %v919_v26 }
 0x134   : > { %v921_v32 = vadd.f32 %v920_v8, %v620_v36  ;;  %v990_v35 = vadd.f32 %v989_v30, %v959_v53 }
 0x136   : > { %v991_v37 = vadd.f32 %v990_v35, %v960_v31  ;;  %v922_v38 = vadd.f32 %v921_v32, %v623_v45 }
 0x138   : > { %v923_v40 = vadd.f32 %v1604_v33, %v922_v38  ;;  %v992_v6 = vadd.f32 %v991_v37, %v961_v17 }
 0x13a   : > { %v924_v43 = vadd.f32 %v1606_v41, %v923_v40  ;;  %v993_v13 = vadd.f32 %v992_v6, %v962_v39 }
 0x13c   : > { %v925_v44 = vrot.slane %v924_v43, 4  ;;  %v994_v47 = vadd.f32 %v993_v13, %v963_v42 }
 0x13e   : > { %v926_v36 = vadd.f32 %v925_v44, %v924_v43  ;;  %v995_v49 = vrot.slane %v994_v47, 4 }
 0x140   : > { %v927_v50 = vrot.slane %v926_v36, 2  ;;  %v996_v45 = vadd.f32 %v995_v49, %v994_v47 }
 0x142   : > { %v928_v51 = vadd.f32 %v927_v50, %v926_v36  ;;  %v997_v52 = vrot.slane %v996_v45, 2 }
 0x144   : > { %v929_v54 = vrot.slane %v928_v51, 1  ;;  %v998_v33 = vadd.f32 %v997_v52, %v996_v45 }
 0x146   : > { %v930_v55 = vadd.f32 %v929_v54, %v928_v51  ;;  %v999_v56 = vrot.slane %v998_v33, 1 }
 0x148   : > { %931 = vst [vmem:[%s207_s20] sm:$0x1] %v930_v55  ;;  %v1000_v41 = vadd.f32 %v999_v56, %v998_v33 }
 0x14a   : > { %1001 = vst [vmem:[%s207_s20 + $0x1] sm:$0x1] %v1000_v41 }
 0x14b PF: > { %s14_s14 = sadd.s32 1, %s1456_s14   ;;  %s1674_s12 = smov %s1452_s13 }
 0x14c   : > { %p11_p6 = scmp.ge.s32.totalorder %s14_s14, 4   ;;  %s1675_s13 = smov %s1677_s15 }
 0x14e   :  { %13 = sbr.rel (!%p11_p6) target bundleno = 2 (0x2), region = 79 }

// kernel: basic_block_forward.7
= control target key start
LH: loop header
LB: loop body
LE: loop exit
PB: predicated region body
PF: predicated region fallthrough
CT: control target
= control target key end

     0   :  { %s951_s21 = smov 0   ;;  %s1193_s0 = inlined_call_operand.vmem [shape: bf16[512,128], index: 0, kind: input, shape index: {}]   ;;  %s1194_s1 = inlined_call_operand.vmem [shape: f32[1,128], index: 1, kind: input, shape index: {}]   ;;  %s1195_s2 = inlined_call_operand.vmem [shape: f32[1,128], index: 2, kind: input, shape index: {}]   ;;  %s1196_s3 = inlined_call_operand.vmem [shape: bf16[512,128], index: 3, kind: input, shape index: {}]   ;;  %s1197_s4 = inlined_call_operand.vmem [shape: f32[1,128], index: 4, kind: input, shape index: {}]   ;;  %s1198_s5 = inlined_call_operand.vmem [shape: f32[1,128], index: 5, kind: input, shape index: {}]   ;;  %s1199_s6 = inlined_call_operand.vmem [shape: f32[512,128], index: 6, kind: output, shape index: {}]  }
   0x1 LB: > { %s725_s22 = sadd.s32 4294967295, %s914_s21   ;;  %p729_p0 = scmp.ge.s32.totalorder %s914_s21, 1  ;;  %s914_s21 = sphi %s951_s21, %s16_s21  }
   0x2   : > { %p224_p1 = scmp.lt.s32.totalorder %s914_s21, 3 }
   0x4   : > { %p225_p2 = pnand %p729_p0, %p224_p1 }
   0x5   : > { %s730_s23 = sshll.u32 (!%p225_p2), %s725_s22, 5  ;;  %v975_v0 = vld [vmem:[%s1194_s1] ss:$0 sm:$0xff] (!%p225_p2) }
   0x6   : > { %228 = sbr.rel (%p225_p2) target bundleno = 88 (0x58), region = 44  ;;  %p260_p3 = scmp.lt.s32.totalorder (!%p225_p2), %s730_s23, 63  ;;  %v980_v1 = vld [vmem:[%s1197_s4] ss:$0 sm:$0xff] (!%p225_p2) }
   0x7   : > { %v989_v10 = vld [vmem:[%s1195_s2] ss:$0 sm:$0xff] (!%p225_p2) }
   0x8   : > { %v994_v11 = vld [vmem:[%s1198_s5] ss:$0 sm:$0xff] (!%p225_p2) }
   0xd   : > { %s1201_s23 = smov (!%p260_p3, %s730_s23), 63 }
   0xe   : > { %s731_s24 = sshll.u32 %s1201_s23, 2  ;;  %s735_s15 = sshll.u32 %s1201_s23, 3 }
   0xf   : > { %s965_s27 = scalar_lea.vmem %s1193_s0, %s731_s24  ;;  %s970_s30 = scalar_lea.vmem %s1196_s3, %s731_s24 }
  0x10   : > { %v743_v2 = vld [vmem:[%s965_s27] sm:$0xff]   ;;  %v870_v4 = vld [vmem:[%s965_s27 + $0x8] sm:$0xff]   ;;  %v871_v24 = vld [vmem:[%s965_s27 + $0x10] sm:$0xff]   ;;  %s1018_s18 = scalar_lea.vmem %s1199_s6, %s735_s15 }
  0x11   : > { %v807_v3 = vld [vmem:[%s970_s30] sm:$0xff]   ;;  %v744_v5 = vunpack.c.l.bf16 %v743_v2  ;;  %v745_v7 = vunpack.c.h.bf16 %v743_v2  ;;  %v885_v9 = vld [vmem:[%s970_s30 + $0x8] sm:$0xff]   ;;  %v748_v12 = vunpack.c.l.bf16 %v870_v4  ;;  %v749_v14 = vunpack.c.h.bf16 %v870_v4  ;;  %v886_v25 = vld [vmem:[%s970_s30 + $0x10] sm:$0xff]  }
  0x12   : > { %v808_v6 = vunpack.c.l.bf16 %v807_v3  ;;  %v809_v8 = vunpack.c.h.bf16 %v807_v3  ;;  %v812_v13 = vunpack.c.l.bf16 %v885_v9  ;;  %v813_v15 = vunpack.c.h.bf16 %v885_v9  ;;  %v872_v42 = vld [vmem:[%s965_s27 + $0x18] sm:$0xff]   ;;  %v873_v52 = vld [vmem:[%s965_s27 + $0x20] sm:$0xff]  }
  0x13   : > { %v348_v16 = vmul.f32 %v744_v5, %v975_v0  ;;  %v349_v18 = vmul.f32 %v745_v7, %v975_v0  ;;  %v350_v20 = vmul.f32 %v748_v12, %v975_v0  ;;  %v351_v22 = vmul.f32 %v749_v14, %v975_v0  ;;  %v887_v43 = vld [vmem:[%s970_s30 + $0x18] sm:$0xff]   ;;  %v888_v57 = vld [vmem:[%s970_s30 + $0x20] sm:$0xff]   ;;  %v874_v14 = vld [vmem:[%s965_s27 + $0x28] sm:$0xff]  }
  0x14   : > { %v490_v17 = vmul.f32 %v808_v6, %v980_v1  ;;  %v491_v19 = vmul.f32 %v809_v8, %v980_v1  ;;  %v492_v21 = vmul.f32 %v812_v13, %v980_v1  ;;  %v493_v23 = vmul.f32 %v813_v15, %v980_v1  ;;  %v889_v15 = vld [vmem:[%s970_s30 + $0x28] sm:$0xff]  }
  0x15   : > { %v387_v26 = vadd.f32 %v989_v10, %v348_v16  ;;  %v388_v28 = vadd.f32 %v989_v10, %v349_v18  ;;  %v389_v30 = vadd.f32 %v989_v10, %v350_v20  ;;  %v390_v32 = vadd.f32 %v989_v10, %v351_v22 }
  0x16   : > { %v529_v27 = vadd.f32 %v994_v11, %v490_v17  ;;  %v530_v29 = vadd.f32 %v994_v11, %v491_v19  ;;  %v531_v31 = vadd.f32 %v994_v11, %v492_v21  ;;  %v532_v33 = vadd.f32 %v994_v11, %v493_v23 }
  0x17   : > { %v752_v36 = vunpack.c.l.bf16 %v871_v24  ;;  %v816_v37 = vunpack.c.l.bf16 %v886_v25  ;;  %v753_v40 = vunpack.c.h.bf16 %v871_v24  ;;  %v817_v41 = vunpack.c.h.bf16 %v886_v25 }
  0x18   : > { %v561_v34 = vadd.f32 %v529_v27, %v387_v26  ;;  %v562_v35 = vadd.f32 %v530_v29, %v388_v28  ;;  %v563_v38 = vadd.f32 %v531_v31, %v389_v30  ;;  %v564_v39 = vadd.f32 %v532_v33, %v390_v32  ;;  %v875_v32 = vld [vmem:[%s965_s27 + $0x30] sm:$0xff]  }
  0x19   : > { %v352_v46 = vmul.f32 %v752_v36, %v975_v0  ;;  %v494_v47 = vmul.f32 %v816_v37, %v980_v1  ;;  %v353_v50 = vmul.f32 %v753_v40, %v975_v0  ;;  %v495_v51 = vmul.f32 %v817_v41, %v980_v1  ;;  %v890_v37 = vld [vmem:[%s970_s30 + $0x30] sm:$0xff]  }
  0x1a   : > { %v593_v44 = vmax.f32 %v561_v34, 0.0  ;;  %v594_v45 = vmax.f32 %v562_v35, 0.0  ;;  %v595_v48 = vmax.f32 %v563_v38, 0.0  ;;  %v596_v49 = vmax.f32 %v564_v39, 0.0 }
  0x1b   : > { %v391_v53 = vadd.f32 %v989_v10, %v352_v46  ;;  %v533_v54 = vadd.f32 %v994_v11, %v494_v47  ;;  %v756_v55 = vunpack.c.l.bf16 %v872_v42  ;;  %v820_v56 = vunpack.c.l.bf16 %v887_v43  ;;  %v876_v46 = vld [vmem:[%s965_s27 + $0x38] sm:$0xff]  }
  0x1c   : > { %625 = vst [vmem:[%s1018_s18] sm:$0xff] %v593_v44  ;;  %626 = vst [vmem:[%s1018_s18 + $0x8] sm:$0xff] %v594_v45  ;;  %v392_v58 = vadd.f32 %v989_v10, %v353_v50  ;;  %v534_v59 = vadd.f32 %v994_v11, %v495_v51  ;;  %v757_v60 = vunpack.c.h.bf16 %v872_v42  ;;  %v821_v61 = vunpack.c.h.bf16 %v887_v43 }
  0x1d   : > { %627 = vst [vmem:[%s1018_s18 + $0x10] sm:$0xff] %v595_v48  ;;  %628 = vst [vmem:[%s1018_s18 + $0x18] sm:$0xff] %v596_v49  ;;  %v565_v62 = vadd.f32 %v533_v54, %v391_v53  ;;  %v354_v63 = vmul.f32 %v756_v55, %v975_v0  ;;  %v496_v2 = vmul.f32 %v820_v56, %v980_v1  ;;  %v760_v3 = vunpack.c.l.bf16 %v873_v52  ;;  %v891_v55 = vld [vmem:[%s970_s30 + $0x38] sm:$0xff]  }
  0x1e   : > { %v566_v4 = vadd.f32 %v534_v59, %v392_v58  ;;  %v355_v5 = vmul.f32 %v757_v60, %v975_v0  ;;  %v497_v6 = vmul.f32 %v821_v61, %v980_v1  ;;  %v824_v7 = vunpack.c.l.bf16 %v888_v57 }
  0x1f   : > { %v597_v8 = vmax.f32 %v565_v62, 0.0  ;;  %v393_v9 = vadd.f32 %v989_v10, %v354_v63  ;;  %v535_v12 = vadd.f32 %v994_v11, %v496_v2  ;;  %v356_v13 = vmul.f32 %v760_v3, %v975_v0 }
  0x20   : > { %v598_v16 = vmax.f32 %v566_v4, 0.0  ;;  %v394_v17 = vadd.f32 %v989_v10, %v355_v5  ;;  %v536_v18 = vadd.f32 %v994_v11, %v497_v6  ;;  %v498_v19 = vmul.f32 %v824_v7, %v980_v1  ;;  %v877_v6 = vld [vmem:[%s965_s27 + $0x40] sm:$0xff]  }
  0x21   : > { %629 = vst [vmem:[%s1018_s18 + $0x20] sm:$0xff] %v597_v8  ;;  %v567_v20 = vadd.f32 %v535_v12, %v393_v9  ;;  %v395_v21 = vadd.f32 %v989_v10, %v356_v13  ;;  %v761_v22 = vunpack.c.h.bf16 %v873_v52  ;;  %v825_v23 = vunpack.c.h.bf16 %v888_v57  ;;  %v892_v13 = vld [vmem:[%s970_s30 + $0x40] sm:$0xff]  }
  0x22   : > { %630 = vst [vmem:[%s1018_s18 + $0x28] sm:$0xff] %v598_v16  ;;  %v568_v24 = vadd.f32 %v536_v18, %v394_v17  ;;  %v537_v25 = vadd.f32 %v994_v11, %v498_v19  ;;  %v764_v26 = vunpack.c.l.bf16 %v874_v14  ;;  %v828_v27 = vunpack.c.l.bf16 %v889_v15 }
  0x23   : > { %v599_v28 = vmax.f32 %v567_v20, 0.0  ;;  %v357_v29 = vmul.f32 %v761_v22, %v975_v0  ;;  %v499_v30 = vmul.f32 %v825_v23, %v980_v1  ;;  %v765_v31 = vunpack.c.h.bf16 %v874_v14 }
  0x24   : > { %v600_v33 = vmax.f32 %v568_v24, 0.0  ;;  %v569_v34 = vadd.f32 %v537_v25, %v395_v21  ;;  %v358_v35 = vmul.f32 %v764_v26, %v975_v0  ;;  %v500_v36 = vmul.f32 %v828_v27, %v980_v1  ;;  %v878_v26 = vld [vmem:[%s965_s27 + $0x48] sm:$0xff]  }
  0x25   : > { %631 = vst [vmem:[%s1018_s18 + $0x30] sm:$0xff] %v599_v28  ;;  %v396_v38 = vadd.f32 %v989_v10, %v357_v29  ;;  %v538_v39 = vadd.f32 %v994_v11, %v499_v30  ;;  %v359_v40 = vmul.f32 %v765_v31, %v975_v0  ;;  %v829_v41 = vunpack.c.h.bf16 %v889_v15  ;;  %v893_v27 = vld [vmem:[%s970_s30 + $0x48] sm:$0xff]  }
  0x26   : > { %632 = vst [vmem:[%s1018_s18 + $0x38] sm:$0xff] %v600_v33  ;;  %v601_v42 = vmax.f32 %v569_v34, 0.0  ;;  %v397_v43 = vadd.f32 %v989_v10, %v358_v35  ;;  %v539_v44 = vadd.f32 %v994_v11, %v500_v36  ;;  %v768_v45 = vunpack.c.l.bf16 %v875_v32 }
  0x27   : > { %v570_v47 = vadd.f32 %v538_v39, %v396_v38  ;;  %v398_v48 = vadd.f32 %v989_v10, %v359_v40  ;;  %v501_v49 = vmul.f32 %v829_v41, %v980_v1  ;;  %v832_v50 = vunpack.c.l.bf16 %v890_v37  ;;  %v879_v40 = vld [vmem:[%s965_s27 + $0x50] sm:$0xff]  }
  0x28   : > { %633 = vst [vmem:[%s1018_s18 + $0x40] sm:$0xff] %v601_v42  ;;  %v571_v51 = vadd.f32 %v539_v44, %v397_v43  ;;  %v360_v52 = vmul.f32 %v768_v45, %v975_v0  ;;  %v769_v53 = vunpack.c.h.bf16 %v875_v32  ;;  %v833_v54 = vunpack.c.h.bf16 %v890_v37  ;;  %v894_v45 = vld [vmem:[%s970_s30 + $0x50] sm:$0xff]  }
  0x29   : > { %v602_v56 = vmax.f32 %v570_v47, 0.0  ;;  %v540_v57 = vadd.f32 %v994_v11, %v501_v49  ;;  %v502_v58 = vmul.f32 %v832_v50, %v980_v1  ;;  %v772_v59 = vunpack.c.l.bf16 %v876_v46 }
  0x2a   : > { %v603_v60 = vmax.f32 %v571_v51, 0.0  ;;  %v399_v61 = vadd.f32 %v989_v10, %v360_v52  ;;  %v361_v62 = vmul.f32 %v769_v53, %v975_v0  ;;  %v503_v63 = vmul.f32 %v833_v54, %v980_v1 }
  0x2b   : > { %634 = vst [vmem:[%s1018_s18 + $0x48] sm:$0xff] %v602_v56  ;;  %v572_v2 = vadd.f32 %v540_v57, %v398_v48  ;;  %v541_v3 = vadd.f32 %v994_v11, %v502_v58  ;;  %v362_v4 = vmul.f32 %v772_v59, %v975_v0  ;;  %v836_v5 = vunpack.c.l.bf16 %v891_v55 }
  0x2c   : > { %635 = vst [vmem:[%s1018_s18 + $0x50] sm:$0xff] %v603_v60  ;;  %v400_v7 = vadd.f32 %v989_v10, %v361_v62  ;;  %v542_v8 = vadd.f32 %v994_v11, %v503_v63  ;;  %v773_v9 = vunpack.c.h.bf16 %v876_v46  ;;  %v837_v12 = vunpack.c.h.bf16 %v891_v55  ;;  %v880_v62 = vld [vmem:[%s965_s27 + $0x58] sm:$0xff]  }
  0x2d   : > { %v604_v14 = vmax.f32 %v572_v2, 0.0  ;;  %v573_v15 = vadd.f32 %v541_v3, %v399_v61  ;;  %v401_v16 = vadd.f32 %v989_v10, %v362_v4  ;;  %v504_v17 = vmul.f32 %v836_v5, %v980_v1  ;;  %v895_v5 = vld [vmem:[%s970_s30 + $0x58] sm:$0xff]  }
  0x2e   : > { %v574_v18 = vadd.f32 %v542_v8, %v400_v7  ;;  %v363_v19 = vmul.f32 %v773_v9, %v975_v0  ;;  %v505_v20 = vmul.f32 %v837_v12, %v980_v1  ;;  %v776_v21 = vunpack.c.l.bf16 %v877_v6 }
  0x2f   : > { %636 = vst [vmem:[%s1018_s18 + $0x58] sm:$0xff] %v604_v14  ;;  %v605_v22 = vmax.f32 %v573_v15, 0.0  ;;  %v543_v23 = vadd.f32 %v994_v11, %v504_v17  ;;  %v840_v24 = vunpack.c.l.bf16 %v892_v13  ;;  %v777_v25 = vunpack.c.h.bf16 %v877_v6 }
  0x30   : > { %v606_v28 = vmax.f32 %v574_v18, 0.0  ;;  %v402_v29 = vadd.f32 %v989_v10, %v363_v19  ;;  %v544_v30 = vadd.f32 %v994_v11, %v505_v20  ;;  %v364_v31 = vmul.f32 %v776_v21, %v975_v0  ;;  %v881_v20 = vld [vmem:[%s965_s27 + $0x60] sm:$0xff]  }
  0x31   : > { %637 = vst [vmem:[%s1018_s18 + $0x60] sm:$0xff] %v605_v22  ;;  %v575_v32 = vadd.f32 %v543_v23, %v401_v16  ;;  %v506_v33 = vmul.f32 %v840_v24, %v980_v1  ;;  %v365_v34 = vmul.f32 %v777_v25, %v975_v0  ;;  %v841_v35 = vunpack.c.h.bf16 %v892_v13  ;;  %v896_v25 = vld [vmem:[%s970_s30 + $0x60] sm:$0xff]  }
  0x32   : > { %638 = vst [vmem:[%s1018_s18 + $0x68] sm:$0xff] %v606_v28  ;;  %v576_v36 = vadd.f32 %v544_v30, %v402_v29  ;;  %v403_v37 = vadd.f32 %v989_v10, %v364_v31  ;;  %v780_v38 = vunpack.c.l.bf16 %v878_v26  ;;  %v844_v39 = vunpack.c.l.bf16 %v893_v27 }
  0x33   : > { %v607_v41 = vmax.f32 %v575_v32, 0.0  ;;  %v545_v42 = vadd.f32 %v994_v11, %v506_v33  ;;  %v404_v43 = vadd.f32 %v989_v10, %v365_v34  ;;  %v507_v44 = vmul.f32 %v841_v35, %v980_v1  ;;  %v882_v34 = vld [vmem:[%s965_s27 + $0x68] sm:$0xff]  }
  0x34   : > { %v608_v46 = vmax.f32 %v576_v36, 0.0  ;;  %v366_v47 = vmul.f32 %v780_v38, %v975_v0  ;;  %v508_v48 = vmul.f32 %v844_v39, %v980_v1  ;;  %v781_v49 = vunpack.c.h.bf16 %v878_v26 }
  0x35   : > { %639 = vst [vmem:[%s1018_s18 + $0x70] sm:$0xff] %v607_v41  ;;  %v577_v50 = vadd.f32 %v545_v42, %v403_v37  ;;  %v546_v51 = vadd.f32 %v994_v11, %v507_v44  ;;  %v845_v52 = vunpack.c.h.bf16 %v893_v27  ;;  %v784_v53 = vunpack.c.l.bf16 %v879_v40 }
  0x36   : > { %640 = vst [vmem:[%s1018_s18 + $0x78] sm:$0xff] %v608_v46  ;;  %v405_v54 = vadd.f32 %v989_v10, %v366_v47  ;;  %v547_v55 = vadd.f32 %v994_v11, %v508_v48  ;;  %v367_v56 = vmul.f32 %v781_v49, %v975_v0  ;;  %v848_v57 = vunpack.c.l.bf16 %v894_v45 }
  0x37   : > { %v609_v58 = vmax.f32 %v577_v50, 0.0  ;;  %v578_v59 = vadd.f32 %v546_v51, %v404_v43  ;;  %v509_v60 = vmul.f32 %v845_v52, %v980_v1  ;;  %v368_v61 = vmul.f32 %v784_v53, %v975_v0  ;;  %v897_v43 = vld [vmem:[%s970_s30 + $0x68] sm:$0xff]  }
  0x38   : > { %v579_v63 = vadd.f32 %v547_v55, %v405_v54  ;;  %v406_v2 = vadd.f32 %v989_v10, %v367_v56  ;;  %v510_v3 = vmul.f32 %v848_v57, %v980_v1  ;;  %v785_v4 = vunpack.c.h.bf16 %v879_v40  ;;  %v883_v56 = vld [vmem:[%s965_s27 + $0x70] sm:$0xff]  }
  0x39   : > { %641 = vst [vmem:[%s1018_s18 + $0x80] sm:$0xff] %v609_v58  ;;  %v610_v6 = vmax.f32 %v578_v59, 0.0  ;;  %v548_v7 = vadd.f32 %v994_v11, %v509_v60  ;;  %v407_v8 = vadd.f32 %v989_v10, %v368_v61  ;;  %v849_v9 = vunpack.c.h.bf16 %v894_v45  ;;  %v898_v57 = vld [vmem:[%s970_s30 + $0x70] sm:$0xff]  }
  0x3a   : > { %v611_v12 = vmax.f32 %v579_v63, 0.0  ;;  %v549_v13 = vadd.f32 %v994_v11, %v510_v3  ;;  %v369_v14 = vmul.f32 %v785_v4, %v975_v0  ;;  %v788_v15 = vunpack.c.l.bf16 %v880_v62 }
  0x3b   : > { %642 = vst [vmem:[%s1018_s18 + $0x88] sm:$0xff] %v610_v6  ;;  %v580_v16 = vadd.f32 %v548_v7, %v406_v2  ;;  %v511_v17 = vmul.f32 %v849_v9, %v980_v1  ;;  %v852_v18 = vunpack.c.l.bf16 %v895_v5  ;;  %v789_v19 = vunpack.c.h.bf16 %v880_v62 }
  0x3c   : > { %643 = vst [vmem:[%s1018_s18 + $0x90] sm:$0xff] %v611_v12  ;;  %v581_v21 = vadd.f32 %v549_v13, %v407_v8  ;;  %v408_v22 = vadd.f32 %v989_v10, %v369_v14  ;;  %v370_v23 = vmul.f32 %v788_v15, %v975_v0  ;;  %v853_v24 = vunpack.c.h.bf16 %v895_v5  ;;  %v884_v14 = vld [vmem:[%s965_s27 + $0x78] sm:$0xff]  }
  0x3d   : > { %v612_v26 = vmax.f32 %v580_v16, 0.0  ;;  %v550_v27 = vadd.f32 %v994_v11, %v511_v17  ;;  %v512_v28 = vmul.f32 %v852_v18, %v980_v1  ;;  %v371_v29 = vmul.f32 %v789_v19, %v975_v0  ;;  %v899_v15 = vld [vmem:[%s970_s30 + $0x78] sm:$0xff]  }
  0x3e   : > { %v613_v30 = vmax.f32 %v581_v21, 0.0  ;;  %v409_v31 = vadd.f32 %v989_v10, %v370_v23  ;;  %v513_v32 = vmul.f32 %v853_v24, %v980_v1  ;;  %v792_v33 = vunpack.c.l.bf16 %v881_v20 }
  0x3f   : > { %644 = vst [vmem:[%s1018_s18 + $0x98] sm:$0xff] %v612_v26  ;;  %v582_v35 = vadd.f32 %v550_v27, %v408_v22  ;;  %v551_v36 = vadd.f32 %v994_v11, %v512_v28  ;;  %v410_v37 = vadd.f32 %v989_v10, %v371_v29  ;;  %v856_v38 = vunpack.c.l.bf16 %v896_v25 }
  0x40   : > { %645 = vst [vmem:[%s1018_s18 + $0xa0] sm:$0xff] %v613_v30  ;;  %v552_v39 = vadd.f32 %v994_v11, %v513_v32  ;;  %v372_v40 = vmul.f32 %v792_v33, %v975_v0  ;;  %v793_v41 = vunpack.c.h.bf16 %v881_v20  ;;  %v857_v42 = vunpack.c.h.bf16 %v896_v25 }
  0x41   : > { %v614_v44 = vmax.f32 %v582_v35, 0.0  ;;  %v583_v45 = vadd.f32 %v551_v36, %v409_v31  ;;  %v514_v46 = vmul.f32 %v856_v38, %v980_v1  ;;  %v796_v47 = vunpack.c.l.bf16 %v882_v34 }
  0x42   : > { %v584_v48 = vadd.f32 %v552_v39, %v410_v37  ;;  %v411_v49 = vadd.f32 %v989_v10, %v372_v40  ;;  %v373_v50 = vmul.f32 %v793_v41, %v975_v0  ;;  %v515_v51 = vmul.f32 %v857_v42, %v980_v1 }
  0x43   : > { %646 = vst [vmem:[%s1018_s18 + $0xa8] sm:$0xff] %v614_v44  ;;  %v615_v52 = vmax.f32 %v583_v45, 0.0  ;;  %v553_v53 = vadd.f32 %v994_v11, %v514_v46  ;;  %v374_v54 = vmul.f32 %v796_v47, %v975_v0  ;;  %v860_v55 = vunpack.c.l.bf16 %v897_v43 }
  0x44   : > { %v616_v58 = vmax.f32 %v584_v48, 0.0  ;;  %v412_v59 = vadd.f32 %v989_v10, %v373_v50  ;;  %v554_v60 = vadd.f32 %v994_v11, %v515_v51  ;;  %v797_v61 = vunpack.c.h.bf16 %v882_v34 }
  0x45   : > { %647 = vst [vmem:[%s1018_s18 + $0xb0] sm:$0xff] %v615_v52  ;;  %v585_v62 = vadd.f32 %v553_v53, %v411_v49  ;;  %v413_v63 = vadd.f32 %v989_v10, %v374_v54  ;;  %v516_v2 = vmul.f32 %v860_v55, %v980_v1  ;;  %v861_v3 = vunpack.c.h.bf16 %v897_v43 }
  0x46   : > { %648 = vst [vmem:[%s1018_s18 + $0xb8] sm:$0xff] %v616_v58  ;;  %v586_v4 = vadd.f32 %v554_v60, %v412_v59  ;;  %v375_v5 = vmul.f32 %v797_v61, %v975_v0  ;;  %v800_v6 = vunpack.c.l.bf16 %v883_v56  ;;  %v864_v7 = vunpack.c.l.bf16 %v898_v57 }
  0x47   : > { %v617_v8 = vmax.f32 %v585_v62, 0.0  ;;  %v555_v9 = vadd.f32 %v994_v11, %v516_v2  ;;  %v517_v12 = vmul.f32 %v861_v3, %v980_v1  ;;  %v801_v13 = vunpack.c.h.bf16 %v883_v56 }
  0x48   : > { %v618_v16 = vmax.f32 %v586_v4, 0.0  ;;  %v414_v17 = vadd.f32 %v989_v10, %v375_v5  ;;  %v376_v18 = vmul.f32 %v800_v6, %v975_v0  ;;  %v518_v19 = vmul.f32 %v864_v7, %v980_v1 }
  0x49   : > { %649 = vst [vmem:[%s1018_s18 + $0xc0] sm:$0xff] %v617_v8  ;;  %v587_v20 = vadd.f32 %v555_v9, %v413_v63  ;;  %v556_v21 = vadd.f32 %v994_v11, %v517_v12  ;;  %v377_v22 = vmul.f32 %v801_v13, %v975_v0  ;;  %v865_v23 = vunpack.c.h.bf16 %v898_v57 }
  0x4a   : > { %650 = vst [vmem:[%s1018_s18 + $0xc8] sm:$0xff] %v618_v16  ;;  %v415_v24 = vadd.f32 %v989_v10, %v376_v18  ;;  %v557_v25 = vadd.f32 %v994_v11, %v518_v19  ;;  %v804_v26 = vunpack.c.l.bf16 %v884_v14  ;;  %v868_v27 = vunpack.c.l.bf16 %v899_v15 }
  0x4b   : > { %v619_v28 = vmax.f32 %v587_v20, 0.0  ;;  %v588_v29 = vadd.f32 %v556_v21, %v414_v17  ;;  %v416_v30 = vadd.f32 %v989_v10, %v377_v22  ;;  %v519_v31 = vmul.f32 %v865_v23, %v980_v1 }
  0x4c   : > { %v589_v32 = vadd.f32 %v557_v25, %v415_v24  ;;  %v378_v33 = vmul.f32 %v804_v26, %v975_v0  ;;  %v520_v34 = vmul.f32 %v868_v27, %v980_v1  ;;  %v805_v35 = vunpack.c.h.bf16 %v884_v14 }
  0x4d   : > { %651 = vst [vmem:[%s1018_s18 + $0xd0] sm:$0xff] %v619_v28  ;;  %v620_v36 = vmax.f32 %v588_v29, 0.0  ;;  %v558_v37 = vadd.f32 %v994_v11, %v519_v31  ;;  %v869_v38 = vunpack.c.h.bf16 %v899_v15 }
  0x4e   : > { %v621_v39 = vmax.f32 %v589_v32, 0.0  ;;  %v417_v40 = vadd.f32 %v989_v10, %v378_v33  ;;  %v559_v41 = vadd.f32 %v994_v11, %v520_v34  ;;  %v379_v42 = vmul.f32 %v805_v35, %v975_v0 }
  0x4f   : > { %652 = vst [vmem:[%s1018_s18 + $0xd8] sm:$0xff] %v620_v36  ;;  %v590_v43 = vadd.f32 %v558_v37, %v416_v30  ;;  %v521_v44 = vmul.f32 %v869_v38, %v980_v1 }
  0x50   : > { %653 = vst [vmem:[%s1018_s18 + $0xe0] sm:$0xff] %v621_v39  ;;  %v591_v45 = vadd.f32 %v559_v41, %v417_v40  ;;  %v418_v46 = vadd.f32 %v989_v10, %v379_v42 }
  0x51   : > { %v622_v47 = vmax.f32 %v590_v43, 0.0  ;;  %v560_v48 = vadd.f32 %v994_v11, %v521_v44 }
  0x52   : > { %v623_v49 = vmax.f32 %v591_v45, 0.0 }
  0x53   : > { %654 = vst [vmem:[%s1018_s18 + $0xe8] sm:$0xff] %v622_v47  ;;  %v592_v50 = vadd.f32 %v560_v48, %v418_v46 }
  0x54   : > { %655 = vst [vmem:[%s1018_s18 + $0xf0] sm:$0xff] %v623_v49 }
  0x55   : > { %v624_v51 = vmax.f32 %v592_v50, 0.0 }
  0x57   : > { %656 = vst [vmem:[%s1018_s18 + $0xf8] sm:$0xff] %v624_v51 }
  0x58 PF: > { %s16_s21 = sadd.s32 1, %s914_s21  }
  0x59   : > { %p13_p4 = scmp.ge.s32.totalorder %s16_s21, 4  }
  0x5b   :  { %15 = sbr.rel (!%p13_p4) target bundleno = 1 (0x1), region = 77 }

</bundles_post_ra>
